<compile_context>
chip_gen: v6e
topology: v6e:2x2x1
jax: 0.10.0
libtpu: 0.0.40
codegen_flags: <defaults>
</compile_context>

<pallas_src>
import jax
import jax.numpy as jnp
from jax.experimental import pallas as pl
from jax.experimental.pallas import tpu as pltpu

# Dispatch to plain XLA below this many bytes of z (kernel overhead dominates).
_MIN_PALLAS_BYTES = 512 << 10

# Minimum sublane packing per dtype itemsize (f32 -> 8, bf16 -> 16, int8/fp8 -> 32).
_SUBLANE = {4: 8, 2: 16, 1: 32}


def _num_tensorcores():
    """Best-effort TensorCore count for one kernel launch (v7x: 2). Falls back to 1."""
    try:
        info = pltpu.get_tpu_info()
        for attr in ("num_cores", "num_tensorcores", "tensor_cores_per_chip",
                     "cores_per_chip"):
            v = getattr(info, attr, None)
            if isinstance(v, int) and v > 0:
                return min(int(v), 2)
    except Exception:
        pass
    try:
        v = getattr(jax.devices()[0], "num_cores", None)
        if isinstance(v, int) and v > 0:
            return min(int(v), 2)
    except Exception:
        pass
    return 1


def _sumsq_kernel(z_ref, out_ref, acc_ref):
    """Running sum of squares over the inner (reduction) grid axis.

    z_ref:   (TILE_ROWS, LANES) input tile, native dtype.
    out_ref: (1, 8, 128) f32 per-split partial-sum block (written once, at last k).
    acc_ref: (8, LANES) f32 VMEM accumulator (persists across k steps).
    """
    k = pl.program_id(1)

    @pl.when(k == 0)
    def _():
        acc_ref[...] = jnp.zeros_like(acc_ref)

    # Widen in-kernel (free under the DMA; required on v5e which has no bf16 VALU).
    z = z_ref[...].astype(jnp.float32)
    zz = z * z
    # Sublane-aligned split (tile_rows, lanes) -> (tile_rows//8, 8, lanes): the
    # leading axis indexes whole 8-sublane vreg row-groups, so the axis-0 sum is a
    # pure VALU tree of vreg adds (no XLU, no full-tile accumulator RMW).
    acc_ref[...] += jnp.sum(zz.reshape(-1, 8, zz.shape[-1]), axis=0)

    @pl.when(k == pl.num_programs(1) - 1)
    def _():
        # Single cross-lane/sublane collapse, once per split. The (1,8,128) block
        # store is tiny and once-per-split, so the broadcast is kept for robust
        # lowering (scalar/SMEM outputs buy nothing at the roofline).
        s = jnp.sum(acc_ref[...])
        out_ref[...] = jnp.full(out_ref.shape, s, dtype=jnp.float32)


def _sum_of_squares_pallas(z, *, lanes=512, target_tile_bytes=4 << 20,
                           num_splits=None):
    """sum(z.astype(f32) ** 2) over all elements of z, via a tiled Pallas reduction."""
    assert lanes % 128 == 0

    itemsize = jnp.dtype(z.dtype).itemsize
    sub = _SUBLANE.get(itemsize, 8)

    if num_splits is None:
        num_splits = _num_tensorcores()
    num_splits = max(1, int(num_splits))

    n = z.size
    flat = z.reshape(-1)          # (B, S) -> (B*S,): free reshape of a dense array.

    rows_avail = n // lanes
    # Target tile rows: ~target_tile_bytes per double-buffered input buffer,
    # rounded to the dtype's sublane packing, capped by the data actually there.
    target_rows = max(sub, (target_tile_bytes // (lanes * itemsize) // sub) * sub)
    tile_rows = min(target_rows, (rows_avail // sub) * sub)

    if tile_rows == 0:
        # Not even one minimal aligned tile: pure-XLA sum of squares.
        return jnp.sum(flat.astype(jnp.float32) ** 2)

    # Only split across cores if every split gets at least one full tile
    # (no zero-padding is ever introduced by the split).
    num_splits = max(1, min(num_splits, rows_avail // tile_rows))
    n_inner = rows_avail // (tile_rows * num_splits)
    rows_main = n_inner * tile_rows * num_splits
    n_main = rows_main * lanes

    # Ragged tail (< num_splits*tile_rows*lanes elements): single-pass plain XLA.
    tail = flat[n_main:]
    tail_sumsq = (jnp.sum(tail.astype(jnp.float32) ** 2)
                  if tail.size else jnp.float32(0.0))

    # For aligned sizes this is the whole array (no slice, no copy); otherwise a
    # contiguous prefix slice + free reshape to a lane/sublane-dense 2D slab.
    main = flat if n_main == n else flat[:n_main]
    z2d = main.reshape(rows_main, lanes)

    out = pl.pallas_call(
        _sumsq_kernel,
        out_shape=jax.ShapeDtypeStruct((num_splits, 8, 128), jnp.float32),
        grid_spec=pltpu.PrefetchScalarGridSpec(
            num_scalar_prefetch=0,
            grid=(num_splits, n_inner),
            in_specs=[
                pl.BlockSpec((tile_rows, lanes),
                             lambda c, k: (c * n_inner + k, 0)),
            ],
            out_specs=pl.BlockSpec((1, 8, 128), lambda c, k: (c, 0, 0)),
            scratch_shapes=[pltpu.VMEM((8, lanes), jnp.float32)],
        ),
        compiler_params=pltpu.CompilerParams(
            dimension_semantics=("parallel", "arbitrary"),
            vmem_limit_bytes=32 << 20),
    )(z2d)

    # Add the (<= num_splits) per-core partials and the ragged tail.
    return jnp.sum(out[:, 0, 0]) + tail_sumsq


def waveglow_loss(z, logdet, *, sigma=1.0, elementwise_mean=True,
                  lanes=512, target_tile_bytes=4 << 20, num_splits=None,
                  force_pallas=False):
    """Pallas implementation of WaveGlowLoss.forward((z, logdet)) (default args)."""
    assert z.ndim == 2, "z must be (batch, segment_size)"
    batch_size, segment_size = z.shape
    sigma2_2 = float(sigma) ** 2 * 2.0

    if not force_pallas and z.size * jnp.dtype(z.dtype).itemsize < _MIN_PALLAS_BYTES:
        # Tiny inputs: launch/pipeline overhead dominates — let XLA fuse it.
        return waveglow_loss_ref(z, logdet, sigma=sigma,
                                 elementwise_mean=elementwise_mean)

    sumsq = _sum_of_squares_pallas(z, lanes=lanes,
                                   target_tile_bytes=target_tile_bytes,
                                   num_splits=num_splits)
    # Per-batch structure cancels under the batch mean:
    #   mean_b( sum_s z^2 / (2 sigma^2) - logdet_b ) = (sum z^2/(2 sigma^2) - sum logdet)/B
    loss = (sumsq / sigma2_2 - jnp.sum(logdet.astype(jnp.float32))) / float(batch_size)
    if elementwise_mean:
        loss = loss / float(segment_size)
    return loss


def waveglow_loss_ref(z, logdet, *, sigma=1.0, elementwise_mean=True):
    """Pure-JAX reference matching the PyTorch forward."""
    sigma2_2 = float(sigma) ** 2 * 2.0
    loss = jnp.sum(z.astype(jnp.float32) ** 2, axis=1) / sigma2_2 - logdet.astype(jnp.float32)
    loss = jnp.mean(loss)
    if elementwise_mean:
        loss = loss / z.shape[1]
    return loss


if __name__ == "__main__":
    key = jax.random.PRNGKey(0)
    kz, kl = jax.random.split(key)

    # Case 1: the module's natural tiny shape (f32). Force the Pallas path with
    # lanes=128 so one minimal (8, 128) tile exists and the kernel actually runs.
    batch, segment = 4, 256
    z = jax.random.normal(kz, (batch, segment), dtype=jnp.float32)
    logdet = jax.random.normal(kl, (batch,), dtype=jnp.float32)
    loss = jax.block_until_ready(
        waveglow_loss(z, logdet, sigma=1.0, elementwise_mean=True,
                      force_pallas=True, lanes=128))
    ref = waveglow_loss_ref(z, logdet, sigma=1.0, elementwise_mean=True)
    assert jnp.allclose(loss, ref, rtol=1e-4, atol=1e-5), (loss, ref)

    # Case 2: bf16 input exercising the multi-step grid and in-kernel widen.
    # Small target_tile_bytes forces several grid steps; tile rows stay a
    # multiple of 16 (bf16 sublane packing), never 8.
    batch2, segment2 = 4, 8192
    z2 = jax.random.normal(kz, (batch2, segment2), dtype=jnp.bfloat16)
    logdet2 = jax.random.normal(kl, (batch2,), dtype=jnp.float32)
    loss2 = jax.block_until_ready(
        waveglow_loss(z2, logdet2, sigma=1.0, elementwise_mean=True,
                      force_pallas=True, target_tile_bytes=16 << 10))
    ref2 = waveglow_loss_ref(z2, logdet2, sigma=1.0, elementwise_mean=True)
    assert jnp.allclose(loss2, ref2, rtol=1e-4, atol=1e-5), (loss2, ref2)

    # Case 3: unaligned size — aligned prefix goes through the kernel, the ragged
    # tail is summed in plain jnp (no padding copy anywhere).
    batch3, segment3 = 3, 5000
    z3 = jax.random.normal(kz, (batch3, segment3), dtype=jnp.float32)
    logdet3 = jax.random.normal(kl, (batch3,), dtype=jnp.float32)
    loss3 = jax.block_until_ready(
        waveglow_loss(z3, logdet3, sigma=1.0, elementwise_mean=True,
                      force_pallas=True))
    ref3 = waveglow_loss_ref(z3, logdet3, sigma=1.0, elementwise_mean=True)
    assert jnp.allclose(loss3, ref3, rtol=1e-4, atol=1e-5), (loss3, ref3)

    print("KERNEL_OK")
</pallas_src>

<mosaic_0001>
module attributes {stable_mosaic.version = 11 : i64} {
  func.func @_sumsq_kernel(%arg0: i32, %arg1: i32, %arg2: memref<8x128xf32, #tpu.memory_space<vmem>>, %arg3: memref<1x8x128xf32, #tpu.memory_space<vmem>>, %arg4: memref<8x128xf32, #tpu.memory_space<vmem>>) attributes {dimension_semantics = [#tpu.dimension_semantics<parallel>, #tpu.dimension_semantics<arbitrary>], iteration_bounds = array<i64: 1, 1>, scalar_prefetch = 0 : i64, scratch_operands = 1 : i64, tpu.core_type = #tpu.core_type<tc>, window_params = [{transform_indices = @transform_0, window_bounds = array<i64: 8, 128>}, {transform_indices = @transform_1, window_bounds = array<i64: 1, 8, 128>}]} {
    %c0_i32 = arith.constant 0 : i32
    %0 = arith.cmpi eq, %arg1, %c0_i32 : i32
    %1 = arith.extui %0 : i1 to i32
    %c0_i32_0 = arith.constant 0 : i32
    %2 = arith.cmpi ne, %1, %c0_i32_0 : i32
    scf.if %2 {
      %cst_8 = arith.constant 0.000000e+00 : f32
      %13 = vector.broadcast %cst_8 : f32 to vector<8x128xf32>
      %c0_9 = arith.constant 0 : index
      %c0_10 = arith.constant 0 : index
      %14 = vector.load %arg4[%c0_9, %c0_10] : memref<8x128xf32, #tpu.memory_space<vmem>>, vector<8x128xf32>
      tpu.vector_store %arg4[%c0_9, %c0_10], %13 {strides = array<i32>} : memref<8x128xf32, #tpu.memory_space<vmem>>, vector<8x128xf32>,
    } else {
    }
    %c0 = arith.constant 0 : index
    %c0_1 = arith.constant 0 : index
    %3 = vector.load %arg2[%c0, %c0_1] : memref<8x128xf32, #tpu.memory_space<vmem>>, vector<8x128xf32>
    %4 = arith.mulf %3, %3 : vector<8x128xf32>
    %c0_2 = arith.constant 0 : index
    %c0_3 = arith.constant 0 : index
    %5 = vector.load %arg4[%c0_2, %c0_3] : memref<8x128xf32, #tpu.memory_space<vmem>>, vector<8x128xf32>
    %6 = vector.shape_cast %4 : vector<8x128xf32> to vector<1x8x128xf32>
    %cst = arith.constant dense<0.000000e+00> : vector<8x128xf32>
    %7 = vector.multi_reduction <add>, %6, %cst [0] : vector<1x8x128xf32> to vector<8x128xf32>
    %8 = arith.addf %5, %7 : vector<8x128xf32>
    %c0_4 = arith.constant 0 : index
    %c0_5 = arith.constant 0 : index
    %9 = vector.load %arg4[%c0_4, %c0_5] : memref<8x128xf32, #tpu.memory_space<vmem>>, vector<8x128xf32>
    tpu.vector_store %arg4[%c0_4, %c0_5], %8 {strides = array<i32>} : memref<8x128xf32, #tpu.memory_space<vmem>>, vector<8x128xf32>,
    %c0_i32_6 = arith.constant 0 : i32
    %10 = arith.cmpi eq, %arg1, %c0_i32_6 : i32
    %11 = arith.extui %10 : i1 to i32
    %c0_i32_7 = arith.constant 0 : i32
    %12 = arith.cmpi ne, %11, %c0_i32_7 : i32
    scf.if %12 {
      %c0_8 = arith.constant 0 : index
      %c0_9 = arith.constant 0 : index
      %13 = vector.load %arg4[%c0_8, %c0_9] : memref<8x128xf32, #tpu.memory_space<vmem>>, vector<8x128xf32>
      %14 = vector.shape_cast %13 : vector<8x128xf32> to vector<1x8x128xf32>
      %cst_10 = arith.constant dense<0.000000e+00> : vector<1xf32>
      %15 = vector.multi_reduction <add>, %14, %cst_10 [1, 2] : vector<1x8x128xf32> to vector<1xf32>
      %16 = vector.shape_cast %15 : vector<1xf32> to vector<1x1x1xf32>
      %17 = vector.extract %16[0, 0, 0] : f32 from vector<1x1x1xf32>
      %18 = vector.broadcast %17 : f32 to vector<1x8x128xf32>
      %c0_11 = arith.constant 0 : index
      %c0_12 = arith.constant 0 : index
      %c0_13 = arith.constant 0 : index
      %19 = vector.load %arg3[%c0_11, %c0_12, %c0_13] : memref<1x8x128xf32, #tpu.memory_space<vmem>>, vector<1x8x128xf32>
      tpu.vector_store %arg3[%c0_11, %c0_12, %c0_13], %18 {strides = array<i32>} : memref<1x8x128xf32, #tpu.memory_space<vmem>>, vector<1x8x128xf32>,
    } else {
    }
    return
  }
  func.func @transform_0(%arg0: i32, %arg1: i32) -> (i32, i32) {
    %c1_i32 = arith.constant 1 : i32
    %0 = arith.muli %arg0, %c1_i32 : i32
    %1 = arith.addi %0, %arg1 : i32
    %c0_i32 = arith.constant 0 : i32
    %c0_i32_0 = arith.constant 0 : i32
    return %1, %c0_i32 : i32, i32
  }
  func.func @transform_1(%arg0: i32, %arg1: i32) -> (i32, i32, i32) {
    %c0_i32 = arith.constant 0 : i32
    %c0_i32_0 = arith.constant 0 : i32
    %c0_i32_1 = arith.constant 0 : i32
    return %arg0, %c0_i32, %c0_i32_0 : i32, i32, i32
  }
}

</mosaic_0001>

<bundles_post_ra>
// kernel: tpu_custom_call.1
= control target key start
LH: loop header
LB: loop body
LE: loop exit
PB: predicated region body
PF: predicated region fallthrough
CT: control target
= control target key end

     0   :  { %6 = vsyncpa [#allocation4], 0  ;;  %s132_s0 = inlined_call_operand.hbm [shape: f32[8,128], index: 0, kind: input, shape index: {}]   ;;  %s133_s1 = inlined_call_operand.hbm [shape: f32[1,8,128], index: 1, kind: output, shape index: {}]  }
   0x1   :  { %7 = vsyncpa [#allocation5], 0  ;;  %s114_s6 = smov [#allocation3]  }
   0x2   :  { %s17_s7 = sshll.u32 %s114_s6, 4  ;;  %s18_s7 = int_to_ptr.vmem [resolvable:$true] %s17_s7 }
   0x3   :  { %s78_s8 = scalar_lea.vmem %s18_s7, 128  ;;  %p83_p1 = scmp.lt.s32.totalorder %s18_s7, %s18_s7 }
   0x4   :  { %p79_p0 = scmp.ne.s32.totalorder %s18_s7, %s78_s8  ;;  %p84_p2 = scmp.lt.s32.totalorder %s78_s8, %s78_s8 }
   0x6   :  { %p85_p3 = por %p84_p2, %p83_p1 }
   0x8   :  { %p86_p4 = pnand %p85_p3, %p79_p0 }
   0xa   :  { %89 = shalt.err (!%p86_p4)
}
   0xb   :  { %20 = dma.hbm_to_vmem [thread:$0]  %s132_s0, 128, %s18_s7, [#allocation4]  }
   0xc   :  { %110 = dma.done.wait [#allocation4], 128  }
   0xd   :  { %111 = vsyncadd [#allocation4], 4294967168  ;;  %v30_v0 = vld [vmem:[#allocation3] sm:$0xff]  ;;  %s115_s11 = smov [#allocation6]  }
   0xe   :  { %v31_v1 = vmul.f32 %v30_v0, %v30_v0  ;;  %s57_s12 = sshll.u32 %s115_s11, 4  ;;  %s58_s12 = int_to_ptr.vmem [resolvable:$true] %s57_s12 }
   0xf   :  { %s90_s0 = scalar_lea.vmem %s58_s12, 128  ;;  %p95_p6 = scmp.lt.s32.totalorder %s58_s12, %s58_s12 }
  0x10   :  { %40 = vadd.xlane.f32.xlu0 %v31_v1  ;;  %p91_p5 = scmp.ne.s32.totalorder %s58_s12, %s90_s0  ;;  %p96_p7 = scmp.lt.s32.totalorder %s90_s0, %s90_s0 }
  0x12   :  { %p97_p8 = por %p96_p7, %p95_p6 }
  0x14   :  { %p98_p9 = pnand %p97_p8, %p91_p5 }
  0x99   :  { %v41_v2 = vpop.xlane.xlu0 %40 }
  0x9a   :  { %v42_v3 = vrot.slane %v41_v2, 4 }
  0x9c   :  { %v43_v4 = vadd.f32 %v42_v3, %v41_v2 }
  0x9e   :  { %v44_v5 = vrot.slane %v43_v4, 2 }
  0xa0   :  { %v45_v6 = vadd.f32 %v44_v5, %v43_v4 }
  0xa2   :  { %v46_v7 = vrot.slane %v45_v6, 1 }
  0xa4   :  { %v47_v8 = vadd.f32 %v46_v7, %v45_v6 }
  0xa6   :  { %66 = vpush %v47_v8 }
  0xd7   :  { %s67_s13 = spop %66 }
  0xd8   :  { %v49_v9 = vstv %s67_s13 }
  0xd9   :  { %50 = vst [vmem:[#allocation6] sm:$0xff] %v49_v9 }
  0xda   :  { %101 = shalt.err (!%p98_p9)
}
  0xdb   :  { %60 = dma.vmem_to_hbm [thread:$0]  %s58_s12, 128, %s133_s1, [#allocation5]  }
  0xdc   :  { %112 = dma.done.wait [#allocation5], 128  }
  0xdd   :  { %113 = vsyncadd [#allocation5], 4294967168 }
  0xde   :  { %64 = vsyncpa [#allocation4], 1 }
  0xdf   :  { %65 = vsyncpa [#allocation5], 1 }

</bundles_post_ra>
